<compile_context>
chip_gen: v6e
topology: v6e:2x2x1
jax: 0.10.0
libtpu: 0.0.40
codegen_flags: <defaults>
</compile_context>

<pallas_src>
import functools

import jax
import jax.numpy as jnp
from jax.experimental import pallas as pl
from jax.experimental.pallas import tpu as pltpu

_LANES = 512                     # lane-dense last dim (multiple of 128)
_ROWS_PER_TILE = 256             # target tile: 256 x 512 f32 = 512 KiB
_VMEM_LIMIT = 32 * 1024 * 1024   # explicit, safe on v5e/v6e/v7x


def _stats_kernel(x_ref, sum_ref, sq_ref, acc_sum, acc_sq):
    """Single-pass global sum and sum-of-squares over row tiles."""
    step = pl.program_id(0)

    @pl.when(step == 0)
    def _init():
        acc_sum[...] = jnp.zeros_like(acc_sum)
        acc_sq[...] = jnp.zeros_like(acc_sq)

    x = x_ref[...].astype(jnp.float32)
    acc_sum[...] += jnp.sum(x, keepdims=True)
    acc_sq[...] += jnp.sum(x * x, keepdims=True)

    @pl.when(step == pl.num_programs(0) - 1)
    def _finalize():
        sum_ref[...] = acc_sum[...]
        sq_ref[...] = acc_sq[...]


def _noise_kernel(std_ref, x_ref, u1_ref, u2_ref, o_ref, *, mean):
    """out = x + (mean + std * z); z via dual-branch Box-Muller."""
    std = std_ref[0]                      # scalar read from SMEM
    half = o_ref.shape[-1] // 2           # lane-aligned (multiple of 128)

    u1 = jnp.maximum(u1_ref[...], 1e-12)  # keep log() finite
    u2 = u2_ref[...]
    r = jnp.sqrt(-2.0 * jnp.log(u1))
    theta = (2.0 * jnp.pi) * u2
    z_a = r * jnp.cos(theta)              # first half of the tile
    z_b = r * jnp.sin(theta)              # second half of the tile

    x = x_ref[...].astype(jnp.float32)
    o_ref[:, :half] = (x[:, :half] + (mean + std * z_a)).astype(o_ref.dtype)
    o_ref[:, half:] = (x[:, half:] + (mean + std * z_b)).astype(o_ref.dtype)


def noise_op(
    x,
    *,
    seed=0,
    mean=0.0,
    factor=1.0,
    noise_type="gaussian",
    noise_mixture="additive",
    add_noise=True,
    training=True,
):
    """Pallas implementation of NoiseOp.forward (gaussian / additive)."""
    if not (training and add_noise):
        return x
    assert noise_type == "gaussian" and noise_mixture == "additive", (
        "only the gaussian/additive path is implemented"
    )
    # TODO(synk): 'uniform' noise_type and 'multiplicative' mixture are trivial
    # elementwise variants and are not wired up here.

    orig_shape = x.shape
    n = x.size  # real element count (zero padding below does not perturb sums)

    # ---- lane-dense 2-D layout: (padded_rows, _LANES) ----
    rows = -(-n // _LANES)
    if rows >= _ROWS_PER_TILE:
        tile_rows = _ROWS_PER_TILE
    else:
        tile_rows = max(8, -(-rows // 8) * 8)       # keep (8,128) tiling legal
    padded_rows = -(-rows // tile_rows) * tile_rows
    padded_n = padded_rows * _LANES
    grid_m = padded_rows // tile_rows

    x_flat = x.reshape(-1)
    if padded_n != n:
        x_flat = jnp.pad(x_flat, (0, padded_n - n))
    x2d = x_flat.reshape(padded_rows, _LANES)

    # ---- pass 1: tiled stats (sum, sumsq) ----
    sum_out, sq_out = pl.pallas_call(
        _stats_kernel,
        out_shape=[
            jax.ShapeDtypeStruct((1, 1), jnp.float32),
            jax.ShapeDtypeStruct((1, 1), jnp.float32),
        ],
        grid=(grid_m,),
        in_specs=[pl.BlockSpec((tile_rows, _LANES), lambda i: (i, 0))],
        out_specs=[
            pl.BlockSpec((1, 1), lambda i: (0, 0)),
            pl.BlockSpec((1, 1), lambda i: (0, 0)),
        ],
        scratch_shapes=[
            pltpu.VMEM((1, 1), jnp.float32),
            pltpu.VMEM((1, 1), jnp.float32),
        ],
        compiler_params=pltpu.CompilerParams(
            dimension_semantics=("arbitrary",),
            vmem_limit_bytes=_VMEM_LIMIT,
        ),
    )(x2d)

    # torch.Tensor.std() is unbiased: var = (sumsq - n*mu^2) / (n - 1).
    # (n == 1 degenerates to NaN, same as torch; single-pass form is slightly
    # less stable for huge means — acceptable for noise injection.)
    total = sum_out[0, 0]
    total_sq = sq_out[0, 0]
    mu = total / n
    var = jnp.maximum(total_sq - n * mu * mu, 0.0) / (n - 1)
    std = jnp.sqrt(var) * jnp.float32(factor)     # additive: x.std() * factor
    std_arr = jnp.reshape(std, (1,)).astype(jnp.float32)

    # ---- pass 2: tiled elementwise noise + add ----
    k1, k2 = jax.random.split(jax.random.PRNGKey(seed))
    half_shape = (padded_rows, _LANES // 2)
    u1 = jax.random.uniform(k1, half_shape, dtype=jnp.float32)
    u2 = jax.random.uniform(k2, half_shape, dtype=jnp.float32)

    kernel = functools.partial(_noise_kernel, mean=float(mean))
    out2d = pl.pallas_call(
        kernel,
        out_shape=jax.ShapeDtypeStruct((padded_rows, _LANES), x.dtype),
        grid=(grid_m,),
        in_specs=[
            pl.BlockSpec(memory_space=pltpu.MemorySpace.SMEM),         # std
            pl.BlockSpec((tile_rows, _LANES), lambda i: (i, 0)),       # x
            pl.BlockSpec((tile_rows, _LANES // 2), lambda i: (i, 0)),  # u1
            pl.BlockSpec((tile_rows, _LANES // 2), lambda i: (i, 0)),  # u2
        ],
        out_specs=pl.BlockSpec((tile_rows, _LANES), lambda i: (i, 0)),
        compiler_params=pltpu.CompilerParams(
            dimension_semantics=("parallel",),
            vmem_limit_bytes=_VMEM_LIMIT,
        ),
    )(std_arr, x2d, u1, u2)

    out_flat = out2d.reshape(-1)
    if padded_n != n:
        out_flat = out_flat[:n]
    return out_flat.reshape(orig_shape)


if __name__ == "__main__":
    key = jax.random.PRNGKey(0)
    x = jax.random.normal(key, (2, 4, 16, 16), dtype=jnp.float32)

    out = noise_op(x, seed=0, mean=0.0, factor=1.0)
    out = jax.block_until_ready(out)

    assert out.shape == x.shape and out.dtype == x.dtype
    assert bool(jnp.all(jnp.isfinite(out)))
    # additive gaussian noise with std ~ x.std(): output must differ from input
    noise = out - x
    assert float(jnp.max(jnp.abs(noise))) > 0.0
    # empirical noise std should be in the right ballpark of x.std() * factor
    x_std = float(jnp.std(x))
    assert 0.2 * x_std < float(jnp.std(noise)) < 5.0 * x_std

    print("KERNEL_OK")
</pallas_src>

<mosaic_0001>
module attributes {stable_mosaic.version = 11 : i64} {
  func.func @_stats_kernel(%arg0: i32, %arg1: memref<8x512xf32, #tpu.memory_space<vmem>>, %arg2: memref<1x1xf32, #tpu.memory_space<vmem>>, %arg3: memref<1x1xf32, #tpu.memory_space<vmem>>, %arg4: memref<1x1xf32, #tpu.memory_space<vmem>>, %arg5: memref<1x1xf32, #tpu.memory_space<vmem>>) attributes {dimension_semantics = [#tpu.dimension_semantics<arbitrary>], iteration_bounds = array<i64: 1>, scalar_prefetch = 0 : i64, scratch_operands = 2 : i64, tpu.core_type = #tpu.core_type<tc>, window_params = [{transform_indices = @transform_0, window_bounds = array<i64: 8, 512>}, {pipeline_mode = #tpu.pipeline_mode<synchronous>, transform_indices = @transform_1, window_bounds = array<i64: 1, 1>}, {pipeline_mode = #tpu.pipeline_mode<synchronous>, transform_indices = @transform_2, window_bounds = array<i64: 1, 1>}]} {
    %c0_i32 = arith.constant 0 : i32
    %0 = arith.cmpi eq, %arg0, %c0_i32 : i32
    %1 = arith.extui %0 : i1 to i32
    %c0_i32_0 = arith.constant 0 : i32
    %2 = arith.cmpi ne, %1, %c0_i32_0 : i32
    scf.if %2 {
      %cst_13 = arith.constant 0.000000e+00 : f32
      %24 = vector.broadcast %cst_13 : f32 to vector<1x1xf32>
      %c0_14 = arith.constant 0 : index
      %c0_15 = arith.constant 0 : index
      %25 = vector.load %arg4[%c0_14, %c0_15] : memref<1x1xf32, #tpu.memory_space<vmem>>, vector<1x1xf32>
      tpu.vector_store %arg4[%c0_14, %c0_15], %24 {strides = array<i32>} : memref<1x1xf32, #tpu.memory_space<vmem>>, vector<1x1xf32>,
      %cst_16 = arith.constant 0.000000e+00 : f32
      %26 = vector.broadcast %cst_16 : f32 to vector<1x1xf32>
      %c0_17 = arith.constant 0 : index
      %c0_18 = arith.constant 0 : index
      %27 = vector.load %arg5[%c0_17, %c0_18] : memref<1x1xf32, #tpu.memory_space<vmem>>, vector<1x1xf32>
      tpu.vector_store %arg5[%c0_17, %c0_18], %26 {strides = array<i32>} : memref<1x1xf32, #tpu.memory_space<vmem>>, vector<1x1xf32>,
    } else {
    }
    %c0 = arith.constant 0 : index
    %c0_1 = arith.constant 0 : index
    %3 = vector.load %arg1[%c0, %c0_1] : memref<8x512xf32, #tpu.memory_space<vmem>>, vector<8x512xf32>
    %c0_2 = arith.constant 0 : index
    %c0_3 = arith.constant 0 : index
    %4 = vector.load %arg4[%c0_2, %c0_3] : memref<1x1xf32, #tpu.memory_space<vmem>>, vector<1x1xf32>
    %5 = vector.shape_cast %3 : vector<8x512xf32> to vector<1x8x512xf32>
    %cst = arith.constant dense<0.000000e+00> : vector<1xf32>
    %6 = vector.multi_reduction <add>, %5, %cst [1, 2] : vector<1x8x512xf32> to vector<1xf32>
    %7 = vector.shape_cast %6 : vector<1xf32> to vector<1x1x1xf32>
    %8 = vector.extract %7[0, 0, 0] : f32 from vector<1x1x1xf32>
    %9 = vector.broadcast %8 : f32 to vector<1x1xf32>
    %10 = arith.addf %4, %9 : vector<1x1xf32>
    %c0_4 = arith.constant 0 : index
    %c0_5 = arith.constant 0 : index
    %11 = vector.load %arg4[%c0_4, %c0_5] : memref<1x1xf32, #tpu.memory_space<vmem>>, vector<1x1xf32>
    tpu.vector_store %arg4[%c0_4, %c0_5], %10 {strides = array<i32>} : memref<1x1xf32, #tpu.memory_space<vmem>>, vector<1x1xf32>,
    %c0_6 = arith.constant 0 : index
    %c0_7 = arith.constant 0 : index
    %12 = vector.load %arg5[%c0_6, %c0_7] : memref<1x1xf32, #tpu.memory_space<vmem>>, vector<1x1xf32>
    %13 = arith.mulf %3, %3 : vector<8x512xf32>
    %14 = vector.shape_cast %13 : vector<8x512xf32> to vector<1x8x512xf32>
    %cst_8 = arith.constant dense<0.000000e+00> : vector<1xf32>
    %15 = vector.multi_reduction <add>, %14, %cst_8 [1, 2] : vector<1x8x512xf32> to vector<1xf32>
    %16 = vector.shape_cast %15 : vector<1xf32> to vector<1x1x1xf32>
    %17 = vector.extract %16[0, 0, 0] : f32 from vector<1x1x1xf32>
    %18 = vector.broadcast %17 : f32 to vector<1x1xf32>
    %19 = arith.addf %12, %18 : vector<1x1xf32>
    %c0_9 = arith.constant 0 : index
    %c0_10 = arith.constant 0 : index
    %20 = vector.load %arg5[%c0_9, %c0_10] : memref<1x1xf32, #tpu.memory_space<vmem>>, vector<1x1xf32>
    tpu.vector_store %arg5[%c0_9, %c0_10], %19 {strides = array<i32>} : memref<1x1xf32, #tpu.memory_space<vmem>>, vector<1x1xf32>,
    %c0_i32_11 = arith.constant 0 : i32
    %21 = arith.cmpi eq, %arg0, %c0_i32_11 : i32
    %22 = arith.extui %21 : i1 to i32
    %c0_i32_12 = arith.constant 0 : i32
    %23 = arith.cmpi ne, %22, %c0_i32_12 : i32
    scf.if %23 {
      %c0_13 = arith.constant 0 : index
      %c0_14 = arith.constant 0 : index
      %24 = vector.load %arg4[%c0_13, %c0_14] : memref<1x1xf32, #tpu.memory_space<vmem>>, vector<1x1xf32>
      %c0_15 = arith.constant 0 : index
      %c0_16 = arith.constant 0 : index
      %25 = vector.load %arg2[%c0_15, %c0_16] : memref<1x1xf32, #tpu.memory_space<vmem>>, vector<1x1xf32>
      tpu.vector_store %arg2[%c0_15, %c0_16], %24 {strides = array<i32>} : memref<1x1xf32, #tpu.memory_space<vmem>>, vector<1x1xf32>,
      %c0_17 = arith.constant 0 : index
      %c0_18 = arith.constant 0 : index
      %26 = vector.load %arg5[%c0_17, %c0_18] : memref<1x1xf32, #tpu.memory_space<vmem>>, vector<1x1xf32>
      %c0_19 = arith.constant 0 : index
      %c0_20 = arith.constant 0 : index
      %27 = vector.load %arg3[%c0_19, %c0_20] : memref<1x1xf32, #tpu.memory_space<vmem>>, vector<1x1xf32>
      tpu.vector_store %arg3[%c0_19, %c0_20], %26 {strides = array<i32>} : memref<1x1xf32, #tpu.memory_space<vmem>>, vector<1x1xf32>,
    } else {
    }
    return
  }
  func.func @transform_0(%arg0: i32) -> (i32, i32) {
    %c0_i32 = arith.constant 0 : i32
    %c0_i32_0 = arith.constant 0 : i32
    return %arg0, %c0_i32 : i32, i32
  }
  func.func @transform_1(%arg0: i32) -> (i32, i32) {
    %c0_i32 = arith.constant 0 : i32
    %c0_i32_0 = arith.constant 0 : i32
    %c0_i32_1 = arith.constant 0 : i32
    return %c0_i32, %c0_i32_0 : i32, i32
  }
  func.func @transform_2(%arg0: i32) -> (i32, i32) {
    %c0_i32 = arith.constant 0 : i32
    %c0_i32_0 = arith.constant 0 : i32
    %c0_i32_1 = arith.constant 0 : i32
    return %c0_i32, %c0_i32_0 : i32, i32
  }
}

</mosaic_0001>

<bundles_post_ra>
// kernel: tpu_custom_call.1
= control target key start
LH: loop header
LB: loop body
LE: loop exit
PB: predicated region body
PF: predicated region fallthrough
CT: control target
= control target key end

     0   :  { %8 = vsyncpa [#allocation5], 0  ;;  %s216_s0 = inlined_call_operand.hbm [shape: f32[8,512], index: 0, kind: input, shape index: {}]   ;;  %s217_s1 = inlined_call_operand.hbm [shape: f32[1,1], index: 1, kind: output, shape index: {0}]   ;;  %s218_s2 = inlined_call_operand.hbm [shape: f32[1,1], index: 2, kind: output, shape index: {1}]  }
   0x1   :  { %9 = vsyncpa [#allocation6], 0 }
   0x2   :  { %10 = vsyncpa [#allocation9], 0  ;;  %s182_s9 = smov [#allocation4]  }
   0x3   :  { %s17_s10 = sshll.u32 %s182_s9, 4  ;;  %s18_s10 = int_to_ptr.vmem [resolvable:$true] %s17_s10 }
   0x4   :  { %s124_s11 = scalar_lea.vmem %s18_s10, 512  ;;  %p129_p1 = scmp.lt.s32.totalorder %s18_s10, %s18_s10 }
   0x5   :  { %p125_p0 = scmp.ne.s32.totalorder %s18_s10, %s124_s11  ;;  %p130_p2 = scmp.lt.s32.totalorder %s124_s11, %s124_s11 }
   0x7   :  { %p131_p3 = por %p130_p2, %p129_p1 }
   0x9   :  { %p132_p4 = pnand %p131_p3, %p125_p0 }
   0xb   :  { %135 = shalt.err (!%p132_p4)
}
   0xc   :  { %20 = dma.hbm_to_vmem [thread:$0]  %s216_s0, 512, %s18_s10, [#allocation5]  }
   0xd   :  { %176 = dma.done.wait [#allocation5], 512  }
   0xe   :  { %177 = vsyncadd [#allocation5], 4294966784  ;;  %v31_v0 = vld [vmem:[#allocation4] sm:$0xff]  ;;  %v32_v1 = vld [vmem:[#allocation4 + $0x8] sm:$0xff]  ;;  %vm28_vm0 = vcmask 0   ;;  %v183_v14 = vmov 0.0  }
   0xf   :  { %v33_v2 = vld [vmem:[#allocation4 + $0x10] sm:$0xff]  ;;  %v36_v3 = vadd.f32 %v32_v1, %v31_v0  ;;  %v53_v4 = vmul.f32 %v31_v0, %v31_v0  ;;  %v54_v5 = vmul.f32 %v32_v1, %v32_v1  ;;  %v34_v7 = vld [vmem:[#allocation4 + $0x18] sm:$0xff]  ;;  %29 = vst.msk [vmem:[#allocation2] sm:$0x1] %vm28_vm0, %v183_v14  ;;  %30 = vst.msk [vmem:[#allocation3] sm:$0x1] %vm28_vm0, %v183_v14 }
  0x10   :  { %v55_v6 = vmul.f32 %v33_v2, %v33_v2  ;;  %v56_v9 = vmul.f32 %v34_v7, %v34_v7  ;;  %s184_s15 = smov [#allocation7]   ;;  %s185_s17 = smov [#allocation8]  }
  0x11   :  { %v37_v8 = vadd.f32 %v36_v3, %v33_v2  ;;  %v57_v10 = vadd.f32 %v54_v5, %v53_v4  ;;  %s85_s16 = sshll.u32 %s184_s15, 4  ;;  %s95_s18 = sshll.u32 %s185_s17, 4  ;;  %s86_s16 = int_to_ptr.vmem [resolvable:$true] %s85_s16  ;;  %s96_s18 = int_to_ptr.vmem [resolvable:$true] %s95_s18 }
  0x12   :  { %s136_s19 = scalar_lea.vmem %s86_s16, 16  ;;  %s140_s20 = scalar_lea.vmem %s86_s16, 32 }
  0x13   :  { %v38_v11 = vadd.f32 %v37_v8, %v34_v7  ;;  %v58_v12 = vadd.f32 %v57_v10, %v55_v6  ;;  %p137_p5 = scmp.ne.s32.totalorder %s86_s16, %s136_s19  ;;  %p141_p6 = scmp.lt.s32.totalorder %s86_s16, %s86_s16 }
  0x14   :  { %p142_p7 = scmp.lt.s32.totalorder %s140_s20, %s136_s19 }
  0x15   :  { %39 = vadd.xlane.f32.xlu0 %v38_v11  ;;  %v59_v13 = vadd.f32 %v58_v12, %v56_v9 }
  0x16   :  { %v35_v29 = vld [vmem:[#allocation2] sm:$0x1]  ;;  %v52_v32 = vld [vmem:[#allocation3] sm:$0x1]  ;;  %p143_p8 = por %p142_p7, %p141_p6 }
  0x18   :  { %p144_p9 = pnand %p143_p8, %p137_p5 }
  0x19   :  { %60 = vadd.xlane.f32.xlu0 %v59_v13 }
  0x9e   :  { %v40_v15 = vpop.xlane.xlu0 %39 }
  0x9f   :  { %v41_v16 = vrot.slane %v40_v15, 4 }
  0xa1   :  { %v42_v17 = vadd.f32 %v41_v16, %v40_v15 }
  0xa2   :  { %v61_v18 = vpop.xlane.xlu0 %60 }
  0xa3   :  { %v43_v19 = vrot.slane %v42_v17, 2  ;;  %v62_v20 = vrot.slane %v61_v18, 4 }
  0xa5   :  { %v63_v21 = vadd.f32 %v62_v20, %v61_v18  ;;  %v44_v22 = vadd.f32 %v43_v19, %v42_v17 }
  0xa7   :  { %v64_v23 = vrot.slane %v63_v21, 2  ;;  %v45_v24 = vrot.slane %v44_v22, 1 }
  0xa9   :  { %v65_v25 = vadd.f32 %v64_v23, %v63_v21  ;;  %v46_v26 = vadd.f32 %v45_v24, %v44_v22 }
  0xab   :  { %108 = vpush %v46_v26  ;;  %v66_v27 = vrot.slane %v65_v25, 1 }
  0xad   :  { %v67_v28 = vadd.f32 %v66_v27, %v65_v25 }
  0xaf   :  { %110 = vpush %v67_v28 }
  0xdc   :  { %s109_s0 = spop %108 }
  0xdd   :  { %v48_v30 = vstv %s109_s0 }
  0xde   :  { %v49_v31 = vadd.f32 %v48_v30, %v35_v29 }
  0xe0   :  { %51 = vst.msk [vmem:[#allocation2] sm:$0x1] %vm28_vm0, %v49_v31  ;;  %s111_s14 = spop %110 }
  0xe1   :  { %v69_v33 = vstv %s111_s14 }
  0xe2   :  { %v70_v34 = vadd.f32 %v69_v33, %v52_v32 }
  0xe4   :  { %71 = vst.msk [vmem:[#allocation3] sm:$0x1] %vm28_vm0, %v70_v34 }
  0xe7   :  { %v75_v35 = vld [vmem:[#allocation2] sm:$0x1] }
  0xe8   :  { %76 = vst.msk [vmem:[#allocation7] sm:$0x1] %vm28_vm0, %v75_v35 }
  0xe9   :  { %147 = shalt.err (!%p144_p9)
}
  0xea   :  { %88 = dma.vmem_to_hbm [thread:$0]  %s86_s16, 16, %s217_s1, [#allocation6]  }
  0xeb   :  { %v77_v36 = vld [vmem:[#allocation3] sm:$0x1]  ;;  %s156_s23 = scalar_lea.vmem %s96_s18, 16  ;;  %s160_s24 = scalar_lea.vmem %s96_s18, 32 }
  0xec   :  { %78 = vst.msk [vmem:[#allocation8] sm:$0x1] %vm28_vm0, %v77_v36  ;;  %p157_p10 = scmp.ne.s32.totalorder %s96_s18, %s156_s23  ;;  %p161_p11 = scmp.lt.s32.totalorder %s96_s18, %s96_s18 }
  0xed   :  { %p162_p12 = scmp.lt.s32.totalorder %s160_s24, %s156_s23 }
  0xef   :  { %p163_p13 = por %p162_p12, %p161_p11 }
  0xf1   :  { %p164_p0 = pnand %p163_p13, %p157_p10 }
  0xf3   :  { %167 = shalt.err (!%p164_p0)
}
  0xf4   :  { %98 = dma.vmem_to_hbm [thread:$0]  %s96_s18, 16, %s218_s2, [#allocation9]  }
  0xf5   :  { %178 = dma.done.wait [#allocation6], 16  }
  0xf6   :  { %179 = vsyncadd [#allocation6], 4294967280 }
  0xf7   :  { %180 = dma.done.wait [#allocation9], 16  }
  0xf8   :  { %181 = vsyncadd [#allocation9], 4294967280 }
  0xf9   :  { %105 = vsyncpa [#allocation5], 1 }
  0xfa   :  { %106 = vsyncpa [#allocation6], 1 }
  0xfb   :  { %107 = vsyncpa [#allocation9], 1 }

</bundles_post_ra>
